<compile_context>
chip_gen: v5e
topology: v5e:2x2
jax: 0.10.0
libtpu: 0.0.40
codegen_flags: <defaults>
</compile_context>

<pallas_src>
import math

import jax
import jax.numpy as jnp
from jax.experimental import pallas as pl
from jax.experimental.pallas import tpu as pltpu


# ---------------------------------------------------------------------------
# Kernel: one (tS, tF) output tile = x_tile @ W_tile + pe_tile
# ---------------------------------------------------------------------------
def _pos_enc_kernel(x_ref, w_ref, pe_ref, o_ref):
    # x_ref:  (tS, M)   row tile of the flattened (B*S_pad, M) input
    # w_ref:  (M, tF)   pre-transposed, column-padded weight (resident per F tile)
    # pe_ref: (tS, tF)  positional-encoding tile, bias already folded in
    # o_ref:  (tS, tF)  lane-dense output tile (tF is a multiple of 128)
    y = jnp.dot(x_ref[...], w_ref[...], preferred_element_type=jnp.float32)  # MXU
    o_ref[...] = (y + pe_ref[...].astype(jnp.float32)).astype(o_ref.dtype)   # VPU


# ---------------------------------------------------------------------------
# Parameter construction / prep (one-time, outside the hot path)
# ---------------------------------------------------------------------------
def _round_up(x: int, m: int) -> int:
    return ((x + m - 1) // m) * m


def make_pe(in_features: int, out_features: int) -> jnp.ndarray:
    """Replicates the PyTorch sin/cos table construction (handles odd F too)."""
    position = jnp.arange(in_features, dtype=jnp.float32)[:, None]              # (S, 1)
    div_term = jnp.exp(
        jnp.arange(0, out_features, 2, dtype=jnp.float32)
        * -(math.log(10000.0) / out_features)
    )                                                                            # (ceil(F/2),)
    sin_part = jnp.sin(position * div_term)                                      # (S, ceil(F/2))
    cos_part = jnp.cos(position * div_term)[:, : out_features // 2]              # (S, floor(F/2))
    pe = jnp.zeros((in_features, out_features), dtype=jnp.float32)
    pe = pe.at[:, 0::2].set(sin_part)
    pe = pe.at[:, 1::2].set(cos_part)
    return pe


def init_params(key, in_features: int, nmodes: int, out_features: int):
    # torch.nn.Linear(nmodes, out_features): weight (F, M), bias (F,)
    # xavier_normal_: std = sqrt(2 / (fan_in + fan_out)); bias zero-init.
    std = math.sqrt(2.0 / (nmodes + out_features))
    w = jax.random.normal(key, (out_features, nmodes), dtype=jnp.float32) * std
    b = jnp.zeros((out_features,), dtype=jnp.float32)
    pe = make_pe(in_features, out_features)
    return w, b, pe


def prepare_params(w, b, pe, dtype=jnp.float32):
    """One-time prep: transpose the weight, fold the bias into pe, and pad
    - output features up to a multiple of 128 (lane-dense kernel stores),
    - positions up to a multiple of 8 (sublane-aligned row tiles).

    NOTE: dtype=jnp.bfloat16 halves HBM read bytes (the in-kernel accumulate
    and pe add stay f32), but it quantizes pe+bias once at prep time, so
    results drift from the f32 reference beyond ~1e-2 tolerances.
    """
    F, M = w.shape
    S, F2 = pe.shape
    assert F2 == F, "pe table and weight disagree on out_features"
    F_pad = _round_up(F, 128)
    S_pad = _round_up(S, 8)
    w_t = jnp.zeros((M, F_pad), dtype=dtype).at[:, :F].set(w.T.astype(dtype))
    pe_b = jnp.zeros((S_pad, F_pad), dtype=dtype).at[:S, :F].set(
        (pe + b[None, :]).astype(dtype))
    return w_t, pe_b


# ---------------------------------------------------------------------------
# Tile / VMEM selection
# ---------------------------------------------------------------------------
def _vmem_budget_and_limit():
    """Generation-aware data-tile budget + matching scoped-VMEM limit."""
    phys = 64 << 20  # conservative fallback (v7x-sized) if the query fails
    try:
        phys = int(pltpu.get_tpu_info().vmem_capacity_bytes)
    except Exception:  # pragma: no cover - older jax / non-TPU tracing
        pass
    # ~48 MiB on 128-MiB parts (v5e/v6e), ~24 MiB on v7x's 64-MiB part.
    budget = min((phys * 3) // 8, 48 << 20)
    limit = min(budget + (16 << 20), phys - (8 << 20))
    return budget, limit


def _choose_f_tile(F_pad: int) -> int:
    """Tile the output-feature (lane) axis so the resident weight block stays
    bounded and each dot maps onto native MXU tile widths."""
    if F_pad <= 512:
        return F_pad
    for tf in (512, 256, 128):
        if F_pad % tf == 0:
            return tf
    return 128  # unreachable: F_pad is always a multiple of 128


def _choose_row_tile(B, S_pad, M, F_pad, tF, in_isz, p_isz, out_isz, budget):
    """Largest sublane-aligned row tile under the VMEM budget.

    The estimate counts the double-buffered x / pe / out tiles at their own
    dtype widths and both pipeline buffers of the weight block.
    Returns (rows_per_tile, span_batches)."""
    N = B * S_pad

    def need(rows):
        return 2 * (rows * M * in_isz          # x tile
                    + rows * tF * p_isz        # pe tile
                    + rows * tF * out_isz      # output tile (out dtype width)
                    + M * tF * p_isz)          # weight block (double-buffered)

    # Tiny problems: one grid step over all rows (pe replicated across batch
    # in the wrapper; cap that replication at ~2 MiB).
    if need(N) <= budget and N * F_pad * p_isz <= (2 << 20):
        return N, True

    # Otherwise the biggest multiple-of-8 divisor of S_pad that fits; tiles
    # never straddle batch boundaries so the pe index_map stays a modulo.
    t = S_pad
    while t >= 8:
        if S_pad % t == 0 and t % 8 == 0 and need(t) <= budget:
            return t, False
        t -= 8
    return 8, False


# ---------------------------------------------------------------------------
# Forward wrapper
# ---------------------------------------------------------------------------
def pos_encoding_forward(x, w_t, pe_b, out_features):
    """x: (B, S, M) -> (B, S, out_features).

    w_t:  (M, F_pad)     pre-transposed, column-padded weight  (prepare_params)
    pe_b: (S_pad, F_pad) bias-folded, padded positional-encoding table
    """
    B, S, M = x.shape
    Mw, F_pad = w_t.shape
    S_pad, F_pad2 = pe_b.shape
    assert Mw == M, "weight in-features must match x's last dim (nmodes)"
    assert F_pad2 == F_pad and out_features <= F_pad
    assert S_pad == _round_up(S, 8), "pe table was built for a different S"

    out_dtype = x.dtype
    if x.dtype != w_t.dtype:
        x = x.astype(w_t.dtype)
    if S_pad != S:  # sublane-align the position axis (zero rows are harmless)
        x = jnp.pad(x, ((0, 0), (0, S_pad - S), (0, 0)))
    N = B * S_pad
    x2 = x.reshape(N, M)

    in_isz = jnp.dtype(x2.dtype).itemsize
    p_isz = jnp.dtype(w_t.dtype).itemsize
    out_isz = jnp.dtype(out_dtype).itemsize

    budget, vmem_limit = _vmem_budget_and_limit()
    tF = _choose_f_tile(F_pad)
    tS, span_batches = _choose_row_tile(B, S_pad, M, F_pad, tF,
                                        in_isz, p_isz, out_isz, budget)

    if span_batches:
        # Single grid step over every row: replicate pe across batch (tiny).
        pe_arg = jnp.tile(pe_b, (B, 1))
    else:
        pe_arg = pe_b
    tiles_per_pe = pe_arg.shape[0] // tS
    if tiles_per_pe == 1:
        pe_index = lambda fj, ri: (0, fj)          # pe block resident
    else:
        pe_index = lambda fj, ri: (ri % tiles_per_pe, fj)  # broadcast over batch

    grid = (F_pad // tF, N // tS)  # (F tiles, row tiles); rows are the fast axis

    out = pl.pallas_call(
        _pos_enc_kernel,
        out_shape=jax.ShapeDtypeStruct((N, F_pad), out_dtype),
        grid_spec=pltpu.PrefetchScalarGridSpec(
            num_scalar_prefetch=0,
            grid=grid,
            in_specs=[
                pl.BlockSpec((tS, M), lambda fj, ri: (ri, 0)),   # x row tile
                pl.BlockSpec((M, tF), lambda fj, ri: (0, fj)),   # weight (resident per F tile)
                pl.BlockSpec((tS, tF), pe_index),                # pe tile
            ],
            out_specs=pl.BlockSpec((tS, tF), lambda fj, ri: (ri, fj)),
        ),
        compiler_params=pltpu.CompilerParams(
            dimension_semantics=("parallel", "parallel"),
            vmem_limit_bytes=vmem_limit,
        ),
    )(x2, w_t, pe_arg)

    # Drop the padding (lane padding on F, sublane padding on S).
    out = out.reshape(B, S_pad, F_pad)
    return out[:, :S, :out_features]


def pos_encoding_ref(x, w, b, pe):
    # Pure-JAX reference mirroring the PyTorch forward.
    x_emb = jnp.einsum("bsm,fm->bsf", x, w) + b
    return x_emb + pe[None, :, : x_emb.shape[-1]]


if __name__ == "__main__":
    # Small shapes: in_features (position axis) = 16, nmodes = 8, out_features = 32
    B, in_features, nmodes, out_features = 2, 16, 8, 32

    key = jax.random.PRNGKey(0)
    k_x, k_w = jax.random.split(key)

    x = jax.random.normal(k_x, (B, in_features, nmodes), dtype=jnp.float32)
    w, b, pe = init_params(k_w, in_features, nmodes, out_features)

    # One-time parameter prep (transpose + bias fold + lane/sublane padding).
    w_t, pe_b = prepare_params(w, b, pe)  # f32 for an exact reference match

    out = pos_encoding_forward(x, w_t, pe_b, out_features)
    out = jax.block_until_ready(out)

    ref = pos_encoding_ref(x, w, b, pe)
    assert out.shape == (B, in_features, out_features)
    assert jnp.allclose(out, ref, atol=1e-5, rtol=1e-5), "mismatch vs reference"

    print("KERNEL_OK")
</pallas_src>

<mosaic_0001>
module attributes {stable_mosaic.version = 11 : i64} {
  func.func @_pos_enc_kernel(%arg0: i32, %arg1: i32, %arg2: memref<32x8xf32, #tpu.memory_space<vmem>>, %arg3: memref<8x128xf32, #tpu.memory_space<vmem>>, %arg4: memref<32x128xf32, #tpu.memory_space<vmem>>, %arg5: memref<32x128xf32, #tpu.memory_space<vmem>>) attributes {dimension_semantics = [#tpu.dimension_semantics<parallel>, #tpu.dimension_semantics<parallel>], iteration_bounds = array<i64: 1, 1>, scalar_prefetch = 0 : i64, scratch_operands = 0 : i64, tpu.core_type = #tpu.core_type<tc>, window_params = [{transform_indices = @transform_0, window_bounds = array<i64: 32, 8>}, {transform_indices = @transform_1, window_bounds = array<i64: 8, 128>}, {transform_indices = @transform_2, window_bounds = array<i64: 32, 128>}, {transform_indices = @transform_3, window_bounds = array<i64: 32, 128>}]} {
    %c0 = arith.constant 0 : index
    %c0_0 = arith.constant 0 : index
    %0 = vector.load %arg2[%c0, %c0_0] : memref<32x8xf32, #tpu.memory_space<vmem>>, vector<32x8xf32>
    %c0_1 = arith.constant 0 : index
    %c0_2 = arith.constant 0 : index
    %1 = vector.load %arg3[%c0_1, %c0_2] : memref<8x128xf32, #tpu.memory_space<vmem>>, vector<8x128xf32>
    %cst = arith.constant dense<0.000000e+00> : vector<32x128xf32>
    %2 = tpu.matmul %0, %1, %cst {dimension_numbers = #tpu.dot_dimension_numbers<[1], [0], [0], [1], [0, 0, 1, 1], [], []>} : vector<32x8xf32>, vector<8x128xf32>, vector<32x128xf32> -> vector<32x128xf32>
    %c0_3 = arith.constant 0 : index
    %c0_4 = arith.constant 0 : index
    %3 = vector.load %arg4[%c0_3, %c0_4] : memref<32x128xf32, #tpu.memory_space<vmem>>, vector<32x128xf32>
    %4 = arith.addf %2, %3 : vector<32x128xf32>
    %c0_5 = arith.constant 0 : index
    %c0_6 = arith.constant 0 : index
    %5 = vector.load %arg5[%c0_5, %c0_6] : memref<32x128xf32, #tpu.memory_space<vmem>>, vector<32x128xf32>
    tpu.vector_store %arg5[%c0_5, %c0_6], %4 {strides = array<i32>} : memref<32x128xf32, #tpu.memory_space<vmem>>, vector<32x128xf32>,
    return
  }
  func.func @transform_0(%arg0: i32, %arg1: i32) -> (i32, i32) {
    %c0_i32 = arith.constant 0 : i32
    %c0_i32_0 = arith.constant 0 : i32
    return %arg1, %c0_i32 : i32, i32
  }
  func.func @transform_1(%arg0: i32, %arg1: i32) -> (i32, i32) {
    %c0_i32 = arith.constant 0 : i32
    %c0_i32_0 = arith.constant 0 : i32
    return %c0_i32, %arg0 : i32, i32
  }
  func.func @transform_2(%arg0: i32, %arg1: i32) -> (i32, i32) {
    %c0_i32 = arith.constant 0 : i32
    %c0_i32_0 = arith.constant 0 : i32
    return %c0_i32, %arg0 : i32, i32
  }
  func.func @transform_3(%arg0: i32, %arg1: i32) -> (i32, i32) {
    %c0_i32 = arith.constant 0 : i32
    return %arg1, %arg0 : i32, i32
  }
}

</mosaic_0001>

<bundles_post_ra>
// kernel: tpu_custom_call.1
= control target key start
LH: loop header
LB: loop body
LE: loop exit
PB: predicated region body
PF: predicated region fallthrough
CT: control target
= control target key end

     0   :  { %vm24_vm0 = vcmask 64512   ;;  %s177_s0 = inlined_call_operand.vmem [shape: f32[32,8], index: 0, kind: input, shape index: {}]   ;;  %s178_s1 = inlined_call_operand.vmem [shape: f32[8,128], index: 1, kind: input, shape index: {}]   ;;  %s179_s2 = inlined_call_operand.vmem [shape: f32[32,128], index: 2, kind: input, shape index: {}]   ;;  %s180_s3 = inlined_call_operand.hbm [shape: f32[32,128], index: 3, kind: output, shape index: {}]  }
   0x1   :  { %v19_v0 = vld [vmem:[%s178_s1] sm:$0xff]  ;;  %v17_v1 = vld [vmem:[%s177_s0 + $0x10] sm:$0xff]  ;;  %v18_v2 = vld [vmem:[%s177_s0 + $0x18] sm:$0xff] }
   0x2   :  { %93 = vmatpush.msra.mxu2 %v19_v0  ;;  %94 = vmatpush.msra.mxu3 %v19_v0  ;;  %v15_v3 = vld [vmem:[%s177_s0] sm:$0xff]  ;;  %v16_v4 = vld [vmem:[%s177_s0 + $0x8] sm:$0xff] }
   0x3   :  { %90 = vmatmul.msk.f32.vlgmr.msra.gmra.mxu2 %vm24_vm0, %v17_v1  ;;  %91 = vmatmul.msk.f32.vlgmr.msra.gmra.mxu3 %vm24_vm0, %v18_v2 }
   0x4   :  { %8 = vsyncpa [#allocation3], 0  ;;  %52 = vmatpush.msra.mxu0 %v19_v0  ;;  %92 = vmatpush.msra.mxu1 %v19_v0  ;;  %v20_v5 = vld [vmem:[%s179_s2] sm:$0xff]  ;;  %v21_v6 = vld [vmem:[%s179_s2 + $0x8] sm:$0xff]  ;;  %s124_s28 = smov [#allocation2]   ;;  %s76_s5 = sshll.u32 %s180_s3, 4  ;;  %s77_s5 = int_to_ptr.hbm [resolvable:$true] %s76_s5 }
   0x5   :  { %88 = vmatmul.msk.f32.vlgmr.msra.gmra.mxu0 %vm24_vm0, %v15_v3  ;;  %89 = vmatmul.msk.f32.vlgmr.msra.gmra.mxu1 %vm24_vm0, %v16_v4  ;;  %v22_v11 = vld [vmem:[%s179_s2 + $0x10] sm:$0xff]  ;;  %v23_v12 = vld [vmem:[%s179_s2 + $0x18] sm:$0xff]  ;;  %s74_s29 = sshll.u32 %s124_s28, 4  ;;  %s125_s6 = smov 128   ;;  %s75_s29 = int_to_ptr.vmem [resolvable:$true] %s74_s29 }
   0x6   :  { %s126_s7 = smov 8  }
  0x82   :  { %v54_v7 = vpop.f32.mrf.mxu0  ;;  %v57_v8 = vpop.f32.mrf.mxu1 }
  0x83   :  { %v55_v9 = vadd.f32 %v54_v7, %v20_v5  ;;  %v58_v10 = vadd.f32 %v57_v8, %v21_v6 }
  0x85   :  { %66 = vst [vmem:[#allocation2] sm:$0xff] %v55_v9 }
  0x86   :  { %67 = vst [vmem:[#allocation2 + $0x8] sm:$0xff] %v58_v10  ;;  %v60_v13 = vpop.f32.mrf.mxu2  ;;  %v63_v14 = vpop.f32.mrf.mxu3 }
  0x87   :  { %v61_v15 = vadd.f32 %v60_v13, %v22_v11  ;;  %v64_v16 = vadd.f32 %v63_v14, %v23_v12 }
  0x89   :  { %68 = vst [vmem:[#allocation2 + $0x10] sm:$0xff] %v61_v15 }
  0x8a   :  { %69 = vst [vmem:[#allocation2 + $0x18] sm:$0xff] %v64_v16 }
  0x8b   :  { %82 = dma.vmem_to_hbm [thread:$0]  %s75_s29, 512, %s77_s5, [#allocation3], %s125_s6, %s125_s6, %s126_s7  }
  0x8c   :  { %122 = dma.done.wait [#allocation3], 512  }
  0x8d   :  { %123 = vsyncadd [#allocation3], 4294966784 }
  0x8e   :  { %87 = vsyncpa [#allocation3], 1 }

</bundles_post_ra>
